<compile_context>
chip_gen: v7x
topology: tpu7x:2x2x1
jax: 0.10.0
libtpu: 0.0.40
codegen_flags: <defaults>
</compile_context>

<pallas_src>
import math

import jax
import jax.numpy as jnp
from jax.experimental import pallas as pl
from jax.experimental.pallas import tpu as pltpu


def _embedding_attention_kernel(x_ref, w1_ref, w2_ref, e_ref, o_ref):
    # x_ref : (NGb*L, G*S)     f32  lane-packed activations (G batches per lane group)
    # w1_ref: (G*S, G*S)       bf16 block-diagonal first linear, (in, out) layout
    # w2_ref: (G*S, G*NL)      bf16 block-diagonal second linear, (in, out) layout
    # e_ref : (G*NL, NL*G*S)   bf16 0/1 indicator spreading att lane (j,n) over its
    #                               S output lanes (output lane order (n, j, s))
    # o_ref : (NGb, NL*G*S)    f32  lane-dense output slab
    n_groups = o_ref.shape[0]            # batch groups in this block
    rows = x_ref.shape[0]                # n_groups * L
    L = rows // n_groups
    packed_lanes = x_ref.shape[1]        # G*S
    gnl = w2_ref.shape[1]                # G*NL
    out_lanes = o_ref.shape[1]           # NL*G*S
    n_rep = out_lanes // packed_lanes    # NL

    x = x_ref[...]                       # f32, reused for the final contraction
    xb = x.astype(jnp.bfloat16)          # bf16 only as MXU input

    # h = tanh(x @ W1^T) and scores = h @ W2^T, fused over all rows with K = G*S
    # (= 128) on the MXU thanks to the block-diagonal packed weights.
    h = jnp.tanh(jnp.dot(xb, w1_ref[...], preferred_element_type=jnp.float32))
    scores = jnp.dot(h.astype(jnp.bfloat16), w2_ref[...],
                     preferred_element_type=jnp.float32)          # (rows, G*NL) f32

    # Softmax over the L (query_len) axis: one vectorized max/exp/sum/recip
    # chain over axis=1 (no per-batch / per-lockup Python loops).
    s3 = scores.reshape(n_groups, L, gnl)
    m = jnp.max(s3, axis=1, keepdims=True)
    e = jnp.exp(s3 - m)
    d = jnp.sum(e, axis=1, keepdims=True)
    att = e * pl.reciprocal(d, approx=True)                       # (n_groups, L, G*NL)
    # TODO(synk): dropout on the attention map is identity at inference (eval mode).

    # out[b, n, :] = sum_l att[b, l, n] * x[b, l, :]
    # Spread each att value across its S output lanes with a tiny 0/1 indicator
    # matmul (MXU is otherwise idle), lane-tile x across the NL groups, multiply,
    # and segment-sum the L sublane groups.  All 128-lane dense.
    att2 = att.reshape(rows, gnl).astype(jnp.bfloat16)
    att_exp = jnp.dot(att2, e_ref[...],
                      preferred_element_type=jnp.float32)          # (rows, NL*G*S)
    x_tiled = x if n_rep == 1 else jnp.concatenate([x] * n_rep, axis=1)
    prod = att_exp * x_tiled                                       # (rows, NL*G*S) f32
    o_ref[...] = jnp.sum(prod.reshape(n_groups, L, out_lanes),
                         axis=1).astype(o_ref.dtype)               # (n_groups, NL*G*S)


def _lane_pack_factor(B, S):
    # Pack G batch elements along lanes so G*S fills the 128-lane vreg width.
    if 128 % S == 0:
        return max(1, math.gcd(128 // S, B))
    return 1


def _num_grid_steps(n_groups, L, out_lanes):
    # Single grid step unless the per-step work is well above the ~600-cycle
    # per-step pipeline overhead AND splitting keeps sublane-aligned blocks
    # (so the output block's second-to-last dim stays a multiple of 8).
    # TODO(synk): could also gate on pltpu.get_tpu_info() to only split on 2-TC parts.
    if n_groups % 16 == 0 and n_groups * L * out_lanes >= (1 << 18):
        return 2
    return 1


def embedding_attention(x, w1_eff, w2_eff):
    """x: [B, L, S] f32; w1_eff: [S, S] ([out, in]); w2_eff: [NL, S] ([out, in])."""
    B, L, S = x.shape
    NL = w2_eff.shape[0]

    G = _lane_pack_factor(B, S)
    NG = B // G
    packed_lanes = G * S
    out_lanes = NL * G * S

    # Lane-pack x: row (g, l), lane (j, s)  <-  x[g*G + j, l, s].
    xp = jnp.transpose(x.reshape(NG, G, L, S), (0, 2, 1, 3)).reshape(NG * L, packed_lanes)

    # Block-diagonal weights in (in, out) layout, built once in the wrapper
    # (no in-kernel transpose; the in-kernel dots contract canonical (M,K)x(K,N)).
    eye_g = jnp.eye(G, dtype=w1_eff.dtype)
    w1_bd = jnp.kron(eye_g, w1_eff.T).astype(jnp.bfloat16)    # (G*S, G*S)
    w2_bd = jnp.kron(eye_g, w2_eff.T).astype(jnp.bfloat16)    # (G*S, G*NL)

    # 0/1 indicator: E[j*NL + n, n*(G*S) + j*S + s] = 1  (spreads att over S lanes).
    r = jnp.arange(G * NL)[:, None]
    c = jnp.arange(out_lanes)[None, :]
    e_ind = (((c // (G * S)) == (r % NL)) &
             (((c // S) % G) == (r // NL))).astype(jnp.bfloat16)   # (G*NL, NL*G*S)

    steps = _num_grid_steps(NG, L, out_lanes)
    tg = NG // steps

    # TODO(synk): optional `mask` argument (masked_fill with -inf) not plumbed through.
    out_slab = pl.pallas_call(
        _embedding_attention_kernel,
        out_shape=jax.ShapeDtypeStruct((NG, out_lanes), x.dtype),
        grid_spec=pltpu.PrefetchScalarGridSpec(
            num_scalar_prefetch=0,
            grid=(steps,),
            in_specs=[
                pl.BlockSpec((tg * L, packed_lanes), lambda i: (i, 0)),
                # Weights / indicator: constant index_map -> fetched once, resident.
                pl.BlockSpec((packed_lanes, packed_lanes), lambda i: (0, 0)),
                pl.BlockSpec((packed_lanes, G * NL), lambda i: (0, 0)),
                pl.BlockSpec((G * NL, out_lanes), lambda i: (0, 0)),
            ],
            out_specs=pl.BlockSpec((tg, out_lanes), lambda i: (i, 0)),
        ),
        compiler_params=pltpu.CompilerParams(
            dimension_semantics=("parallel",),
            vmem_limit_bytes=32 * 1024 * 1024,  # tiny tiles; well within v7x's 64 MiB
        ),
    )(xp, w1_bd, w2_bd, e_ind)

    # Unpack lanes (n, j, s) -> [B, NL, S]  (b = g*G + j).
    return (jnp.transpose(out_slab.reshape(NG, NL, G, S), (0, 2, 1, 3))
            .reshape(B, NL, S))


def _weight_norm_effective(v, g):
    # PyTorch weight_norm(Linear) default dim=0: per output-row norm.
    # v: [out, in], g: [out, 1]  ->  w = g * v / ||v||_row
    norm = jnp.sqrt(jnp.sum(v * v, axis=1, keepdims=True))
    return g * v / norm


def _reference_f32(x, w1_eff, w2_eff):
    # Exact module semantics (f32 everywhere, eval mode, mask=None).
    h = jnp.tanh(jnp.einsum("bls,os->blo", x, w1_eff))
    scores = jnp.einsum("blo,no->bln", h, w2_eff)               # [B, L, NL]
    att = jax.nn.softmax(jnp.swapaxes(scores, 1, 2), axis=2)    # [B, NL, L]
    return jnp.einsum("bnl,bls->bns", att, x)


def _reference_bf16_path(x, w1_eff, w2_eff):
    # Same op order / precision choices as the kernel (bf16 MXU inputs, f32
    # accumulation, bf16-rounded attention weights), minus the approx reciprocal.
    xb = x.astype(jnp.bfloat16)
    w1b = w1_eff.astype(jnp.bfloat16)
    w2b = w2_eff.astype(jnp.bfloat16)
    h = jnp.tanh(jnp.einsum("bls,os->blo", xb, w1b,
                            preferred_element_type=jnp.float32))
    scores = jnp.einsum("blo,no->bln", h.astype(jnp.bfloat16), w2b,
                        preferred_element_type=jnp.float32)
    att = jax.nn.softmax(jnp.swapaxes(scores, 1, 2), axis=2)
    att = att.astype(jnp.bfloat16).astype(jnp.float32)          # mirror kernel's bf16 spread
    return jnp.einsum("bnl,bls->bns", att, x,
                      precision=jax.lax.Precision.HIGHEST)      # kernel epilogue is f32-exact


if __name__ == "__main__":
    key = jax.random.PRNGKey(0)
    B, L, S, NL = 16, 8, 32, 4  # batch, query_len, size, n_lockups  (G=4 -> 128 lanes)

    k_x, k_v1, k_g1, k_v2, k_g2 = jax.random.split(key, 5)
    x = jax.random.normal(k_x, (B, L, S), dtype=jnp.float32)

    # Deterministic synthetic parameters (weight_norm parametrization: v and g).
    v1 = jax.random.normal(k_v1, (S, S), dtype=jnp.float32) * 0.1
    g1 = 1.0 + 0.1 * jax.random.normal(k_g1, (S, 1), dtype=jnp.float32)
    v2 = jax.random.normal(k_v2, (NL, S), dtype=jnp.float32) * 0.1
    g2 = 1.0 + 0.1 * jax.random.normal(k_g2, (NL, 1), dtype=jnp.float32)

    w1_eff = _weight_norm_effective(v1, g1)  # [S, S]  ([out, in])
    w2_eff = _weight_norm_effective(v2, g2)  # [NL, S] ([out, in])

    out = embedding_attention(x, w1_eff, w2_eff)
    out = jax.block_until_ready(out)
    assert out.shape == (B, NL, S)

    # Tight check vs a reference mirroring the kernel's precision choices
    # (bf16 MXU inputs, f32 accumulation, bf16 att; approx recip adds ~1e-3 rel).
    ref_bf16 = _reference_bf16_path(x, w1_eff, w2_eff)
    assert jnp.allclose(out, ref_bf16, atol=5e-3, rtol=5e-3), "mismatch vs bf16-path reference"

    # Loose check vs the exact f32 module semantics (tolerance widened because
    # the kernel intentionally uses bf16 MXU inputs + approx reciprocal).
    ref_f32 = _reference_f32(x, w1_eff, w2_eff)
    assert jnp.allclose(out, ref_f32, atol=5e-2, rtol=5e-2), "mismatch vs f32 reference"

    print("KERNEL_OK")
</pallas_src>

<mosaic_0001>
module attributes {stable_mosaic.version = 11 : i64} {
  func.func @_embedding_attention_kernel(%arg0: i32, %arg1: memref<32x128xf32, #tpu.memory_space<vmem>>, %arg2: memref<128x128xbf16, #tpu.memory_space<vmem>>, %arg3: memref<128x16xbf16, #tpu.memory_space<vmem>>, %arg4: memref<16x512xbf16, #tpu.memory_space<vmem>>, %arg5: memref<4x512xf32, #tpu.memory_space<vmem>>) attributes {dimension_semantics = [#tpu.dimension_semantics<parallel>], iteration_bounds = array<i64: 1>, scalar_prefetch = 0 : i64, scratch_operands = 0 : i64, tpu.core_type = #tpu.core_type<tc>, window_params = [{transform_indices = @transform_0, window_bounds = array<i64: 32, 128>}, {pipeline_mode = #tpu.pipeline_mode<synchronous>, transform_indices = @transform_1, window_bounds = array<i64: 128, 128>}, {pipeline_mode = #tpu.pipeline_mode<synchronous>, transform_indices = @transform_2, window_bounds = array<i64: 128, 16>}, {pipeline_mode = #tpu.pipeline_mode<synchronous>, transform_indices = @transform_3, window_bounds = array<i64: 16, 512>}, {transform_indices = @transform_4, window_bounds = array<i64: 4, 512>}]} {
    %c0 = arith.constant 0 : index
    %c0_0 = arith.constant 0 : index
    %0 = vector.load %arg1[%c0, %c0_0] : memref<32x128xf32, #tpu.memory_space<vmem>>, vector<32x128xf32>
    %1 = arith.truncf %0 : vector<32x128xf32> to vector<32x128xbf16>
    %c0_1 = arith.constant 0 : index
    %c0_2 = arith.constant 0 : index
    %2 = vector.load %arg2[%c0_1, %c0_2] : memref<128x128xbf16, #tpu.memory_space<vmem>>, vector<128x128xbf16>
    %cst = arith.constant dense<0.000000e+00> : vector<32x128xf32>
    %3 = tpu.matmul %1, %2, %cst {dimension_numbers = #tpu.dot_dimension_numbers<[1], [0], [0], [1], [0, 0, 1, 1], [], []>} : vector<32x128xbf16>, vector<128x128xbf16>, vector<32x128xf32> -> vector<32x128xf32>
    %4 = math.tanh %3 : vector<32x128xf32>
    %5 = arith.truncf %4 : vector<32x128xf32> to vector<32x128xbf16>
    %c0_3 = arith.constant 0 : index
    %c0_4 = arith.constant 0 : index
    %6 = vector.load %arg3[%c0_3, %c0_4] : memref<128x16xbf16, #tpu.memory_space<vmem>>, vector<128x16xbf16>
    %cst_5 = arith.constant dense<0.000000e+00> : vector<32x16xf32>
    %7 = tpu.matmul %5, %6, %cst_5 {dimension_numbers = #tpu.dot_dimension_numbers<[1], [0], [0], [1], [0, 0, 1, 1], [], []>} : vector<32x128xbf16>, vector<128x16xbf16>, vector<32x16xf32> -> vector<32x16xf32>
    %8 = vector.shape_cast %7 : vector<32x16xf32> to vector<4x8x16xf32>
    %cst_6 = arith.constant dense<0xFF800000> : vector<4x16xf32>
    %9 = vector.multi_reduction <maximumf>, %8, %cst_6 [1] : vector<4x8x16xf32> to vector<4x16xf32>
    %10 = vector.shape_cast %9 : vector<4x16xf32> to vector<4x1x16xf32>
    %11 = vector.broadcast %10 : vector<4x1x16xf32> to vector<4x8x16xf32>
    %12 = arith.subf %8, %11 : vector<4x8x16xf32>
    %13 = math.exp %12 : vector<4x8x16xf32>
    %cst_7 = arith.constant dense<0.000000e+00> : vector<4x16xf32>
    %14 = vector.multi_reduction <add>, %13, %cst_7 [1] : vector<4x8x16xf32> to vector<4x16xf32>
    %15 = vector.shape_cast %14 : vector<4x16xf32> to vector<4x1x16xf32>
    %16 = tpu.reciprocal %15 {approx = true} : vector<4x1x16xf32> -> vector<4x1x16xf32>
    %17 = vector.broadcast %16 : vector<4x1x16xf32> to vector<4x8x16xf32>
    %18 = arith.mulf %13, %17 : vector<4x8x16xf32>
    %19 = vector.shape_cast %18 : vector<4x8x16xf32> to vector<32x16xf32>
    %20 = arith.truncf %19 : vector<32x16xf32> to vector<32x16xbf16>
    %c0_8 = arith.constant 0 : index
    %c0_9 = arith.constant 0 : index
    %21 = vector.load %arg4[%c0_8, %c0_9] : memref<16x512xbf16, #tpu.memory_space<vmem>>, vector<16x512xbf16>
    %cst_10 = arith.constant dense<0.000000e+00> : vector<32x512xf32>
    %22 = tpu.matmul %20, %21, %cst_10 {dimension_numbers = #tpu.dot_dimension_numbers<[1], [0], [0], [1], [0, 0, 1, 1], [], []>} : vector<32x16xbf16>, vector<16x512xbf16>, vector<32x512xf32> -> vector<32x512xf32>
    %23 = tpu.concatenate %0, %0, %0, %0 in 1 : vector<32x128xf32>, vector<32x128xf32>, vector<32x128xf32>, vector<32x128xf32> -> vector<32x512xf32>
    %24 = arith.mulf %22, %23 : vector<32x512xf32>
    %25 = vector.shape_cast %24 : vector<32x512xf32> to vector<4x8x512xf32>
    %cst_11 = arith.constant dense<0.000000e+00> : vector<4x512xf32>
    %26 = vector.multi_reduction <add>, %25, %cst_11 [1] : vector<4x8x512xf32> to vector<4x512xf32>
    %c0_12 = arith.constant 0 : index
    %c0_13 = arith.constant 0 : index
    %27 = vector.load %arg5[%c0_12, %c0_13] : memref<4x512xf32, #tpu.memory_space<vmem>>, vector<4x512xf32>
    tpu.vector_store %arg5[%c0_12, %c0_13], %26 {strides = array<i32>} : memref<4x512xf32, #tpu.memory_space<vmem>>, vector<4x512xf32>,
    return
  }
  func.func @transform_0(%arg0: i32) -> (i32, i32) {
    %c0_i32 = arith.constant 0 : i32
    %c0_i32_0 = arith.constant 0 : i32
    return %arg0, %c0_i32 : i32, i32
  }
  func.func @transform_1(%arg0: i32) -> (i32, i32) {
    %c0_i32 = arith.constant 0 : i32
    %c0_i32_0 = arith.constant 0 : i32
    %c0_i32_1 = arith.constant 0 : i32
    return %c0_i32, %c0_i32_0 : i32, i32
  }
  func.func @transform_2(%arg0: i32) -> (i32, i32) {
    %c0_i32 = arith.constant 0 : i32
    %c0_i32_0 = arith.constant 0 : i32
    %c0_i32_1 = arith.constant 0 : i32
    return %c0_i32, %c0_i32_0 : i32, i32
  }
  func.func @transform_3(%arg0: i32) -> (i32, i32) {
    %c0_i32 = arith.constant 0 : i32
    %c0_i32_0 = arith.constant 0 : i32
    %c0_i32_1 = arith.constant 0 : i32
    return %c0_i32, %c0_i32_0 : i32, i32
  }
  func.func @transform_4(%arg0: i32) -> (i32, i32) {
    %c0_i32 = arith.constant 0 : i32
    %c0_i32_0 = arith.constant 0 : i32
    return %arg0, %c0_i32 : i32, i32
  }
}

</mosaic_0001>

<bundles_post_ra>
// kernel: tpu_custom_call.1
= control target key start
LH: loop header
LB: loop body
LE: loop exit
PB: predicated region body
PF: predicated region fallthrough
CT: control target
= control target key end

     0   :  { %9 = vsyncpa [#allocation3], 0  ;;  %s1055_s0 = inlined_call_operand.hbm [shape: f32[32,128], index: 0, kind: input, shape index: {}]   ;;  %s1056_s1 = inlined_call_operand.vmem [shape: bf16[128,128], index: 1, kind: input, shape index: {}]   ;;  %s1057_s2 = inlined_call_operand.vmem [shape: bf16[128,16], index: 2, kind: input, shape index: {}]   ;;  %s1058_s3 = inlined_call_operand.hbm [shape: bf16[16,512], index: 3, kind: input, shape index: {}]   ;;  %s1059_s4 = inlined_call_operand.hbm [shape: f32[4,512], index: 4, kind: output, shape index: {}]  }
   0x1   :  { %10 = vsyncpa [#allocation6], 0 }
   0x2   :  { %11 = vsyncpa [#allocation4], 0  ;;  %s890_s15 = smov [#allocation2]   ;;  %s818_s19 = scalar_lea.hbm %s1055_s0, 512 }
   0x3   :  { %s17_s16 = sshll.u32 %s890_s15, 4  ;;  %p819_p0 = scmp.ne.s32.totalorder %s1055_s0, %s818_s19  ;;  %s18_s16 = int_to_ptr.vmem [resolvable:$true] %s17_s16 }
   0x4   :  { %p822_p1 = scmp.lt.u32.totalorder %s818_s19, %s1055_s0 }
   0x6   :  { %p824_p2 = pnand %p822_p1, %p819_p0 }
   0x8   :  { %827 = shalt.err (!%p824_p2)
}
   0x9   :  { %s828_s24 = scalar_lea.vmem %s18_s16, 512  ;;  %p833_p4 = scmp.lt.s32.totalorder %s18_s16, %s18_s16 }
   0xa   :  { %p829_p3 = scmp.ne.s32.totalorder %s18_s16, %s828_s24  ;;  %p834_p5 = scmp.lt.s32.totalorder %s828_s24, %s828_s24 }
   0xc   :  { %p835_p6 = por %p834_p5, %p833_p4 }
   0xe   :  { %p836_p7 = pnand %p835_p6, %p829_p3 }
  0x10   :  { %839 = shalt.err (!%p836_p7)
}
  0x11   :  { %s891_s25 = smov 128   ;;  %s892_s26 = smov 8  }
  0x12   :  { %23 = dma.hbm_to_vmem [thread:$0]  %s1055_s0, 512, %s18_s16, [#allocation3], %s891_s25, %s891_s25, %s892_s26  }
  0x13   :  { %s893_s29 = smov [#allocation5]   ;;  %s840_s7 = scalar_lea.hbm %s1058_s3, 512 }
  0x14   :  { %s33_s30 = sshll.u32 %s893_s29, 4  ;;  %p841_p8 = scmp.ne.s32.totalorder %s1058_s3, %s840_s7  ;;  %s34_s30 = int_to_ptr.vmem [resolvable:$true] %s33_s30 }
  0x15   :  { %p844_p9 = scmp.lt.u32.totalorder %s840_s7, %s1058_s3 }
  0x17   :  { %p846_p10 = pnand %p844_p9, %p841_p8 }
  0x19   :  { %849 = shalt.err (!%p846_p10)
}
  0x1a   :  { %s850_s12 = scalar_lea.vmem %s34_s30, 512  ;;  %p855_p12 = scmp.lt.s32.totalorder %s34_s30, %s34_s30 }
  0x1b   :  { %p851_p11 = scmp.ne.s32.totalorder %s34_s30, %s850_s12  ;;  %p856_p13 = scmp.lt.s32.totalorder %s850_s12, %s850_s12 }
  0x1d   :  { %p857_p0 = por %p856_p13, %p855_p12 }
  0x1f   :  { %p858_p1 = pnand %p857_p0, %p851_p11 }
  0x21   :  { %861 = shalt.err (!%p858_p1)
}
  0x22   :  { %s894_s0 = smov 256   ;;  %s895_s13 = smov 16  }
  0x23   :  { %39 = dma.hbm_to_vmem [thread:$0]  %s1058_s3, 512, %s34_s30, [#allocation6], %s894_s0, %s894_s0, %s895_s13  }
  0x24   :  { %884 = dma.done.wait [#allocation3], 512  }
  0x25   :  { %885 = vsyncadd [#allocation3], 4294966784 }
  0x26   :  { %886 = dma.done.wait [#allocation6], 512  }
  0x27   :  { %887 = vsyncadd [#allocation6], 4294966784  ;;  %v772_v0 = vld [vmem:[%s1056_s1] sm:$0xff]   ;;  %v773_v1 = vld [vmem:[%s1056_s1 + $0x8] sm:$0xff]   ;;  %v896_v36 = vmov 0   ;;  %vm285_vm0 = vcmask 130048  }
  0x28   :  { %724 = vmatprep.subr.bf16.mxu0 %v772_v0  ;;  %v774_v2 = vld [vmem:[%s1056_s1 + $0x10] sm:$0xff]   ;;  %v775_v3 = vld [vmem:[%s1056_s1 + $0x18] sm:$0xff]   ;;  %v959_v4 = vld [vmem:[#allocation2] sm:$0xff]  ;;  %vm637_vm1 = vcmask 1041409   ;;  %vm639_vm2 = vcmask 1045509   ;;  %vm642_vm3 = vcmask 1042434  }
  0x29   :  { %725 = vmatpush3.bf16.msra.mxu0 %v772_v0  ;;  %v961_v5 = vld [vmem:[#allocation2 + $0x8] sm:$0xff]  ;;  %v780_v7 = vld [vmem:[%s1057_s2] sm:$0xff]   ;;  %v782_v10 = vld [vmem:[%s1057_s2 + $0x10] sm:$0xff]   ;;  %vm644_vm4 = vcmask 1046534   ;;  %vm647_vm5 = vcmask 1043459   ;;  %vm649_vm6 = vcmask 1047559  }
  0x2a   :  { %726 = vmatprep.subr.bf16.mxu0 %v773_v1  ;;  %v51_v6 = vpack.c.bf16 %v961_v5, %v959_v4  ;;  %v781_v8 = vld [vmem:[%s1057_s2 + $0x8] sm:$0xff]   ;;  %v776_v9 = vld [vmem:[%s1056_s1 + $0x20] sm:$0xff]   ;;  %744 = vmatprep.subr.bf16.mxu1 %v780_v7  ;;  %v783_v12 = vld [vmem:[%s1057_s2 + $0x18] sm:$0xff]  }
  0x2b   :  { %745 = vmatpush3.bf16.msra.mxu1 %v780_v7  ;;  %v777_v11 = vld [vmem:[%s1056_s1 + $0x28] sm:$0xff]   ;;  %v778_v13 = vld [vmem:[%s1056_s1 + $0x30] sm:$0xff]   ;;  %v779_v14 = vld [vmem:[%s1056_s1 + $0x38] sm:$0xff]  }
  0x2c   :  { %740 = vmatprep.mubr.bf16.mxu0 %v51_v6  ;;  %746 = vmatprep.subr.bf16.mxu1 %v781_v8  ;;  %v989_v15 = vld [vmem:[#allocation2 + $0x10] sm:$0xff]  ;;  %v991_v16 = vld [vmem:[#allocation2 + $0x18] sm:$0xff]  ;;  %v784_v18 = vld [vmem:[%s1057_s2 + $0x20] sm:$0xff]  }
  0x2d   :  { %727 = vmatpush3.bf16.msra.mxu0 %v773_v1  ;;  %v52_v17 = vpack.c.bf16 %v991_v16, %v989_v15  ;;  %v785_v19 = vld [vmem:[%s1057_s2 + $0x28] sm:$0xff]   ;;  %v786_v20 = vld [vmem:[%s1057_s2 + $0x30] sm:$0xff]   ;;  %v787_v21 = vld [vmem:[%s1057_s2 + $0x38] sm:$0xff]   ;;  %s897_s2 = smov [#allocation7]  }
  0x2e   :  { %728 = vmatprep.subr.bf16.mxu0 %v774_v2  ;;  %v790_v32 = vld [vmem:[#allocation5 + $0x4] ss:$16 sps:$4 sm:$0xff]   ;;  %v793_v33 = vld [vmem:[#allocation5 + $0xc] ss:$16 sps:$4 sm:$0xff]   ;;  %v788_v34 = vld [vmem:[#allocation5] ss:$16 sps:$4 sm:$0xff]  }
  0x2f   :  { %747 = vmatpush3.bf16.msra.mxu1 %v781_v8  ;;  %v791_v35 = vld [vmem:[#allocation5 + $0x8] ss:$16 sps:$4 sm:$0xff]   ;;  %s670_s19 = sshll.u32 %s897_s2, 4  ;;  %s671_s19 = int_to_ptr.vmem [resolvable:$true] %s670_s19 }
  0x30   :  { %748 = vmatprep.subr.bf16.mxu1 %v782_v10  ;;  %s862_s20 = scalar_lea.vmem %s671_s19, 256  ;;  %p867_p3 = scmp.lt.s32.totalorder %s671_s19, %s671_s19 }
  0x31   :  { %729 = vmatpush3.bf16.msra.mxu0 %v774_v2  ;;  %p863_p2 = scmp.ne.s32.totalorder %s671_s19, %s862_s20  ;;  %p868_p4 = scmp.lt.s32.totalorder %s862_s20, %s862_s20 }
  0x32   :  { %730 = vmatprep.subr.bf16.mxu0 %v775_v3 }
  0x33   :  { %749 = vmatpush3.bf16.msra.mxu1 %v782_v10  ;;  %p869_p5 = por %p868_p4, %p867_p3 }
  0x34   :  { %750 = vmatprep.subr.bf16.mxu1 %v783_v12 }
  0x35   :  { %731 = vmatpush3.bf16.msra.mxu0 %v775_v3  ;;  %p870_p6 = pnand %p869_p5, %p863_p2 }
  0x36   :  { %732 = vmatprep.subr.bf16.mxu0 %v776_v9 }
  0x37   :  { %751 = vmatpush3.bf16.msra.mxu1 %v783_v12 }
  0x38   :  { %752 = vmatprep.subr.bf16.mxu1 %v784_v18 }
  0x39   :  { %733 = vmatpush3.bf16.msra.mxu0 %v776_v9 }
  0x3a   :  { %734 = vmatprep.subr.bf16.mxu0 %v777_v11 }
  0x3b   :  { %753 = vmatpush3.bf16.msra.mxu1 %v784_v18 }
  0x3c   :  { %754 = vmatprep.subr.bf16.mxu1 %v785_v19 }
  0x3d   :  { %735 = vmatpush3.bf16.msra.mxu0 %v777_v11 }
  0x3e   :  { %736 = vmatprep.subr.bf16.mxu0 %v778_v13 }
  0x3f   :  { %755 = vmatpush3.bf16.msra.mxu1 %v785_v19 }
  0x40   :  { %756 = vmatprep.subr.bf16.mxu1 %v786_v20 }
  0x41   :  { %737 = vmatpush3.bf16.msra.mxu0 %v778_v13 }
  0x42   :  { %738 = vmatprep.subr.bf16.mxu0 %v779_v14 }
  0x43   :  { %757 = vmatpush3.bf16.msra.mxu1 %v786_v20 }
  0x44   :  { %758 = vmatprep.subr.bf16.mxu1 %v787_v21 }
  0x45   :  { %739 = vmatpush3.bf16.msra.mxu0 %v779_v14 }
  0x46   :  { %394 = vmatprep.subr.bf16.mxu0 %v790_v32 }
  0x47   :  { %759 = vmatpush3.bf16.msra.mxu1 %v787_v21 }
  0x48   :  { %741 = vmatmul.mubr.bf16.vlgmr.msra.gmra.mrb[0].mxu0 %v52_v17  ;;  %447 = vmatprep.subr.bf16.mxu1 %v793_v33 }
  0x49   :  { %395 = vmatpush1.bf16.msra.mxu0 %v788_v34  ;;  %426 = vmatprep.mubr.bf16.mxu0 %v896_v36 }
 0x11b   :  { %v742_v22 = vpop.f32.mrb[0].mxu0 }
 0x11c   :  { %794 = vtanh.f32 %v742_v22  ;;  %v151_v23 = vpop.f32.mrb[1].mxu0 }
 0x11d   :  { %796 = vtanh.f32 %v151_v23  ;;  %v743_v24 = vpop.f32.mrb[2].mxu0 }
 0x11e   :  { %798 = vtanh.f32 %v743_v24  ;;  %v154_v25 = vpop.f32.mrb[3].mxu0 }
 0x11f   :  { %800 = vtanh.f32 %v154_v25 }
 0x126   :  { %v795_v26 = vpop.eup %794 }
 0x127   :  { %v797_v27 = vpop.eup %796 }
 0x128   :  { %v799_v28 = vpop.eup %798 }
 0x129   :  { %v801_v29 = vpop.eup %800  ;;  %v171_v30 = vpack.c.bf16 %v799_v28, %v795_v26 }
 0x12a   :  { %v170_v31 = vpack.c.bf16 %v801_v29, %v797_v27 }
 0x12c   :  { %760 = vmatprep.mubr.bf16.mxu1 %v170_v31 }
 0x12d   :  { %761 = vmatmul.mubr.bf16.vlgmr.msra.gmra.mrb[0].mxu1 %v171_v30 }
 0x12e   :  { %448 = vmatpush1.bf16.msra.mxu1 %v791_v35  ;;  %479 = vmatprep.mubr.bf16.mxu1 %v896_v36 }
 0x200   :  { %v762_v37 = vpop.f32.mrb[0].mxu1 }
 0x201   :  { %v300_v38 = vsel %vm285_vm0, %v762_v37, -inf  ;;  %v270_v39 = vpop.f32.mrb[1].mxu1 }
 0x202   :  { %v301_v40 = vrot.slane %v300_v38, 4  ;;  %v286_v41 = vsel %vm285_vm0, %v270_v39, -inf  ;;  %v763_v42 = vpop.f32.mrb[2].mxu1 }
 0x203   :  { %v287_v43 = vrot.slane %v286_v41, 4  ;;  %v307_v44 = vsel %vm285_vm0, %v763_v42, -inf  ;;  %v273_v45 = vpop.f32.mrb[3].mxu1 }
 0x204   :  { %v302_v46 = vmax.f32 %v300_v38, %v301_v40  ;;  %v308_v47 = vrot.slane %v307_v44, 4  ;;  %v293_v48 = vsel %vm285_vm0, %v273_v45, -inf }
 0x205   :  { %v288_v49 = vmax.f32 %v286_v41, %v287_v43  ;;  %v294_v50 = vrot.slane %v293_v48, 4 }
 0x206   :  { %v303_v51 = vrot.slane %v302_v46, 2  ;;  %v309_v52 = vmax.f32 %v307_v44, %v308_v47 }
 0x207   :  { %v289_v53 = vrot.slane %v288_v49, 2  ;;  %v295_v54 = vmax.f32 %v293_v48, %v294_v50 }
 0x208   :  { %v304_v55 = vmax.f32 %v302_v46, %v303_v51  ;;  %v310_v56 = vrot.slane %v309_v52, 2 }
 0x209   :  { %v290_v57 = vmax.f32 %v288_v49, %v289_v53  ;;  %v296_v58 = vrot.slane %v295_v54, 2 }
 0x20a   :  { %v305_v59 = vrot.slane %v304_v55, 1  ;;  %v311_v60 = vmax.f32 %v309_v52, %v310_v56 }
 0x20b   :  { %v291_v61 = vrot.slane %v290_v57, 1  ;;  %v297_v62 = vmax.f32 %v295_v54, %v296_v58 }
 0x20c   :  { %v306_v63 = vmax.f32 %v304_v55, %v305_v59  ;;  %v312_v0 = vrot.slane %v311_v60, 1 }
 0x20d   :  { %v292_v1 = vmax.f32 %v290_v57, %v291_v61  ;;  %v298_v2 = vrot.slane %v297_v62, 1 }
 0x20e   :  { %v316_v3 = vsub.f32 %v762_v37, %v306_v63  ;;  %v313_v6 = vmax.f32 %v311_v60, %v312_v0 }
 0x20f   :  { %v314_v7 = vsub.f32 %v270_v39, %v292_v1  ;;  %v299_v8 = vmax.f32 %v297_v62, %v298_v2 }
 0x210   :  { %v322_v9 = vmul.f32 1.442695, %v316_v3  ;;  %v317_v10 = vsub.f32 %v763_v42, %v313_v6 }
 0x211   :  { %v318_v11 = vmul.f32 1.442695, %v314_v7  ;;  %v315_v12 = vsub.f32 %v273_v45, %v299_v8 }
 0x212   :  { %802 = vpow2.f32 %v322_v9  ;;  %v324_v13 = vmul.f32 1.442695, %v317_v10 }
 0x213   :  { %804 = vpow2.f32 %v318_v11  ;;  %v320_v14 = vmul.f32 1.442695, %v315_v12 }
 0x214   :  { %806 = vpow2.f32 %v324_v13 }
 0x215   :  { %808 = vpow2.f32 %v320_v14 }
 0x21c   :  { %v803_v17 = vpop.eup %802 }
 0x21d   :  { %v805_v18 = vpop.eup %804  ;;  %v340_v19 = vsel %vm285_vm0, %v803_v17, 0.0 }
 0x21e   :  { %v807_v20 = vpop.eup %806  ;;  %v341_v21 = vrot.slane %v340_v19, 4  ;;  %v326_v22 = vsel %vm285_vm0, %v805_v18, 0.0 }
 0x21f   :  { %v809_v23 = vpop.eup %808  ;;  %v327_v24 = vrot.slane %v326_v22, 4  ;;  %v347_v25 = vsel %vm285_vm0, %v807_v20, 0.0 }
 0x220   :  { %v342_v26 = vadd.f32 %v341_v21, %v340_v19  ;;  %v348_v27 = vrot.slane %v347_v25, 4  ;;  %v333_v28 = vsel %vm285_vm0, %v809_v23, 0.0 }
 0x221   :  { %v328_v29 = vadd.f32 %v327_v24, %v326_v22  ;;  %v334_v30 = vrot.slane %v333_v28, 4 }
 0x222   :  { %v343_v31 = vrot.slane %v342_v26, 2  ;;  %v349_v32 = vadd.f32 %v348_v27, %v347_v25 }
 0x223   :  { %v329_v33 = vrot.slane %v328_v29, 2  ;;  %v335_v34 = vadd.f32 %v334_v30, %v333_v28 }
 0x224   :  { %v344_v35 = vadd.f32 %v343_v31, %v342_v26  ;;  %v350_v37 = vrot.slane %v349_v32, 2 }
 0x225   :  { %v330_v38 = vadd.f32 %v329_v33, %v328_v29  ;;  %v336_v39 = vrot.slane %v335_v34, 2 }
 0x226   :  { %v345_v40 = vrot.slane %v344_v35, 1  ;;  %v351_v41 = vadd.f32 %v350_v37, %v349_v32 }
 0x227   :  { %v331_v42 = vrot.slane %v330_v38, 1  ;;  %v337_v43 = vadd.f32 %v336_v39, %v335_v34 }
 0x228   :  { %v346_v44 = vadd.f32 %v345_v40, %v344_v35  ;;  %v352_v45 = vrot.slane %v351_v41, 1 }
 0x229   :  { %v332_v46 = vadd.f32 %v331_v42, %v330_v38  ;;  %v338_v47 = vrot.slane %v337_v43, 1 }
 0x22a   :  { %810 = vrcp.f32 %v346_v44  ;;  %v353_v48 = vadd.f32 %v352_v45, %v351_v41 }
 0x22b   :  { %812 = vrcp.f32 %v332_v46  ;;  %v339_v49 = vadd.f32 %v338_v47, %v337_v43 }
 0x22c   :  { %814 = vrcp.f32 %v353_v48 }
 0x22d   :  { %816 = vrcp.f32 %v339_v49 }
 0x234   :  { %v811_v50 = vpop.eup %810 }
 0x235   :  { %v813_v51 = vpop.eup %812  ;;  %v360_v54 = vmul.f32 %v811_v50, %v803_v17 }
 0x236   :  { %v815_v52 = vpop.eup %814  ;;  %v358_v56 = vmul.f32 %v813_v51, %v805_v18 }
 0x237   :  { %v817_v53 = vpop.eup %816  ;;  %v361_v55 = vmul.f32 %v815_v52, %v807_v20 }
 0x238   :  { %v359_v57 = vmul.f32 %v817_v53, %v809_v23 }
 0x239   :  { %v363_v58 = vpack.c.bf16 %v361_v55, %v360_v54 }
 0x23a   :  { %v362_v59 = vpack.c.bf16 %v359_v57, %v358_v56 }
 0x23c   :  { %700 = vmatmul.mubr.msk.bf16.vlgmr.msra.gmra.mrb[4].mxu0 %vm285_vm0, %v362_v59  ;;  %702 = vmatmul.mubr.msk.bf16.vlgmr.msra.gmra.mrb[4].mxu1 %vm285_vm0, %v362_v59 }
 0x23d   :  { %436 = vmatprep.mubr.bf16.mxu0 %v896_v36  ;;  %489 = vmatprep.mubr.bf16.mxu1 %v896_v36 }
 0x244   :  { %701 = vmatmul.mubr.msk.bf16.gmra.mrb[8].mxu0 %vm285_vm0, %v363_v58  ;;  %703 = vmatmul.mubr.msk.bf16.gmra.mrb[8].mxu1 %vm285_vm0, %v363_v58 }
 0x30f   :  { %v428_v60 = vpop.f32.mrb[4].mxu0  ;;  %v481_v61 = vpop.f32.mrb[4].mxu1 }
 0x310   :  { %v500_v62 = vmul.f32 %v428_v60, %v959_v4  ;;  %v502_v63 = vmul.f32 %v481_v61, %v959_v4  ;;  %v430_v0 = vpop.f32.mrb[5].mxu0  ;;  %v483_v1 = vpop.f32.mrb[5].mxu1 }
 0x311   :  { %v501_v2 = vmul.f32 %v430_v0, %v959_v4  ;;  %v503_v3 = vmul.f32 %v483_v1, %v959_v4  ;;  %v432_v6 = vpop.f32.mrb[6].mxu0  ;;  %v485_v7 = vpop.f32.mrb[6].mxu1 }
 0x312   :  { %v516_v8 = vrot.slane %v500_v62, 4  ;;  %v528_v36 = vrot.slane %v502_v63, 4  ;;  %v504_v9 = vmul.f32 %v432_v6, %v961_v5  ;;  %v506_v10 = vmul.f32 %v485_v7, %v961_v5  ;;  %v434_v11 = vpop.f32.mrb[7].mxu0  ;;  %v487_v12 = vpop.f32.mrb[7].mxu1 }
 0x313   :  { %v522_v13 = vrot.slane %v501_v2, 4  ;;  %v534_v14 = vrot.slane %v503_v3, 4  ;;  %v505_v17 = vmul.f32 %v434_v11, %v961_v5  ;;  %v507_v18 = vmul.f32 %v487_v12, %v961_v5 }
 0x314   :  { %v517_v19 = vadd.f32 %v516_v8, %v500_v62  ;;  %v529_v20 = vadd.f32 %v528_v36, %v502_v63  ;;  %v540_v21 = vrot.slane %v504_v9, 4  ;;  %v552_v4 = vrot.slane %v506_v10, 4 }
 0x315   :  { %v523_v22 = vadd.f32 %v522_v13, %v501_v2  ;;  %v535_v23 = vadd.f32 %v534_v14, %v503_v3  ;;  %v546_v24 = vrot.slane %v505_v17, 4  ;;  %v558_v25 = vrot.slane %v507_v18, 4 }
 0x316   :  { %v518_v26 = vrot.slane %v517_v19, 2  ;;  %v530_v27 = vrot.slane %v529_v20, 2  ;;  %v541_v28 = vadd.f32 %v540_v21, %v504_v9  ;;  %v553_v29 = vadd.f32 %v552_v4, %v506_v10 }
 0x317   :  { %v524_v30 = vrot.slane %v523_v22, 2  ;;  %v536_v31 = vrot.slane %v535_v23, 2  ;;  %v547_v32 = vadd.f32 %v546_v24, %v505_v17  ;;  %v559_v33 = vadd.f32 %v558_v25, %v507_v18  ;;  %v438_v34 = vpop.f32.mrb[8].mxu0  ;;  %v491_v35 = vpop.f32.mrb[8].mxu1 }
 0x318   :  { %v519_v37 = vadd.f32 %v518_v26, %v517_v19  ;;  %v531_v5 = vadd.f32 %v530_v27, %v529_v20  ;;  %v542_v38 = vrot.slane %v541_v28, 2  ;;  %v554_v39 = vrot.slane %v553_v29, 2  ;;  %v440_v40 = vpop.f32.mrb[9].mxu0  ;;  %v493_v41 = vpop.f32.mrb[9].mxu1 }
 0x319   :  { %v525_v42 = vadd.f32 %v524_v30, %v523_v22  ;;  %v537_v43 = vadd.f32 %v536_v31, %v535_v23  ;;  %v548_v44 = vrot.slane %v547_v32, 2  ;;  %v560_v45 = vrot.slane %v559_v33, 2  ;;  %v442_v46 = vpop.f32.mrb[10].mxu0  ;;  %v495_v47 = vpop.f32.mrb[10].mxu1 }
 0x31a   :  { %v520_v48 = vrot.slane %v519_v37, 1  ;;  %v532_v49 = vrot.slane %v531_v5, 1  ;;  %v543_v50 = vadd.f32 %v542_v38, %v541_v28  ;;  %v555_v51 = vadd.f32 %v554_v39, %v553_v29  ;;  %v444_v52 = vpop.f32.mrb[11].mxu0  ;;  %v497_v53 = vpop.f32.mrb[11].mxu1 }
 0x31b   :  { %v526_v54 = vrot.slane %v525_v42, 1  ;;  %v538_v55 = vrot.slane %v537_v43, 1  ;;  %v549_v56 = vadd.f32 %v548_v44, %v547_v32  ;;  %v561_v57 = vadd.f32 %v560_v45, %v559_v33 }
 0x31c   :  { %v521_v58 = vadd.f32 %v520_v48, %v519_v37  ;;  %v533_v59 = vadd.f32 %v532_v49, %v531_v5  ;;  %v544_v60 = vrot.slane %v543_v50, 1  ;;  %v556_v61 = vrot.slane %v555_v51, 1 }
 0x31d   :  { %v527_v62 = vadd.f32 %v526_v54, %v525_v42  ;;  %v539_v63 = vadd.f32 %v538_v55, %v537_v43  ;;  %v550_v0 = vrot.slane %v549_v56, 1  ;;  %v562_v1 = vrot.slane %v561_v57, 1 }
 0x31e   :  { %v545_v2 = vadd.f32 %v544_v60, %v543_v50  ;;  %v557_v3 = vadd.f32 %v556_v61, %v555_v51  ;;  %v508_v6 = vmul.f32 %v438_v34, %v989_v15  ;;  %v510_v7 = vmul.f32 %v491_v35, %v989_v15 }
 0x31f   :  { %v628_v8 = vcombine.low %v521_v58, %v527_v62  ;;  %v629_v36 = vcombine.low %v533_v59, %v539_v63  ;;  %v551_v9 = vadd.f32 %v550_v0, %v549_v56  ;;  %v563_v10 = vadd.f32 %v562_v1, %v561_v57 }
 0x320   :  { %v564_v11 = vrot.slane %v508_v6, 4  ;;  %v576_v12 = vrot.slane %v510_v7, 4  ;;  %v509_v13 = vmul.f32 %v440_v40, %v989_v15  ;;  %v511_v14 = vmul.f32 %v493_v41, %v989_v15 }
 0x321   :  { %v630_v17 = vcombine.low %v545_v2, %v551_v9  ;;  %v631_v18 = vcombine.low %v557_v3, %v563_v10  ;;  %v512_v19 = vmul.f32 %v442_v46, %v991_v16  ;;  %v514_v20 = vmul.f32 %v495_v47, %v991_v16 }
 0x322   :  { %v565_v21 = vadd.f32 %v564_v11, %v508_v6  ;;  %v577_v4 = vadd.f32 %v576_v12, %v510_v7  ;;  %v570_v22 = vrot.slane %v509_v13, 4  ;;  %v582_v23 = vrot.slane %v511_v14, 4 }
 0x323   :  { %v636_v24 = vrot.slane %v630_v17, 7  ;;  %v651_v25 = vrot.slane %v631_v18, 7  ;;  %v588_v26 = vrot.slane %v512_v19, 4  ;;  %v600_v27 = vrot.slane %v514_v20, 4 }
 0x324   :  { %v566_v28 = vrot.slane %v565_v21, 2  ;;  %v578_v29 = vrot.slane %v577_v4, 2  ;;  %v571_v30 = vadd.f32 %v570_v22, %v509_v13  ;;  %v583_v31 = vadd.f32 %v582_v23, %v511_v14 }
 0x325   :  { %v638_v15 = vsel %vm637_vm1, %v636_v24, %v628_v8  ;;  %v652_v32 = vsel %vm637_vm1, %v651_v25, %v629_v36  ;;  %v589_v33 = vadd.f32 %v588_v26, %v512_v19  ;;  %v601_v34 = vadd.f32 %v600_v27, %v514_v20 }
 0x326   :  { %v567_v35 = vadd.f32 %v566_v28, %v565_v21  ;;  %v579_v37 = vadd.f32 %v578_v29, %v577_v4  ;;  %v572_v5 = vrot.slane %v571_v30, 2  ;;  %v584_v38 = vrot.slane %v583_v31, 2 }
 0x327   :  { %v590_v39 = vrot.slane %v589_v33, 2  ;;  %v602_v40 = vrot.slane %v601_v34, 2  ;;  %v513_v41 = vmul.f32 %v444_v52, %v991_v16  ;;  %v515_v42 = vmul.f32 %v497_v53, %v991_v16 }
 0x328   :  { %v568_v43 = vrot.slane %v567_v35, 1  ;;  %v580_v44 = vrot.slane %v579_v37, 1  ;;  %v573_v45 = vadd.f32 %v572_v5, %v571_v30  ;;  %v585_v46 = vadd.f32 %v584_v38, %v583_v31 }
 0x329   :  { %v591_v47 = vadd.f32 %v590_v39, %v589_v33  ;;  %v603_v48 = vadd.f32 %v602_v40, %v601_v34  ;;  %v594_v49 = vrot.slane %v513_v41, 4  ;;  %v606_v50 = vrot.slane %v515_v42, 4 }
 0x32a   :  { %v569_v51 = vadd.f32 %v568_v43, %v567_v35  ;;  %v581_v54 = vadd.f32 %v580_v44, %v579_v37  ;;  %v574_v55 = vrot.slane %v573_v45, 1  ;;  %v586_v56 = vrot.slane %v585_v46, 1 }
 0x32b   :  { %v595_v57 = vadd.f32 %v594_v49, %v513_v41  ;;  %v607_v58 = vadd.f32 %v606_v50, %v515_v42  ;;  %v640_v52 = vsel %vm639_vm2, %v636_v24, %v638_v15  ;;  %v653_v16 = vsel %vm639_vm2, %v651_v25, %v652_v32 }
 0x32c   :  { %v575_v59 = vadd.f32 %v574_v55, %v573_v45  ;;  %v587_v60 = vadd.f32 %v586_v56, %v585_v46  ;;  %v592_v53 = vrot.slane %v591_v47, 1  ;;  %v604_v61 = vrot.slane %v603_v48, 1 }
 0x32d   :  { %v596_v62 = vrot.slane %v595_v57, 2  ;;  %v608_v63 = vrot.slane %v607_v58, 2 }
 0x32e   :  { %v632_v0 = vcombine.low %v569_v51, %v575_v59  ;;  %v633_v1 = vcombine.low %v581_v54, %v587_v60  ;;  %v593_v8 = vadd.f32 %v592_v53, %v591_v47  ;;  %v605_v36 = vadd.f32 %v604_v61, %v603_v48 }
 0x32f   :  { %v597_v2 = vadd.f32 %v596_v62, %v595_v57  ;;  %v609_v3 = vadd.f32 %v608_v63, %v607_v58 }
 0x330   :  { %v641_v6 = vrot.slane %v632_v0, 6  ;;  %v654_v7 = vrot.slane %v633_v1, 6 }
 0x331   :  { %v598_v9 = vrot.slane %v597_v2, 1  ;;  %v610_v10 = vrot.slane %v609_v3, 1 }
 0x332   :  { %v643_v11 = vsel %vm642_vm3, %v641_v6, %v640_v52  ;;  %v655_v12 = vsel %vm642_vm3, %v654_v7, %v653_v16 }
 0x333   :  { %v599_v13 = vadd.f32 %v598_v9, %v597_v2  ;;  %v611_v14 = vadd.f32 %v610_v10, %v609_v3  ;;  %v645_v17 = vsel %vm644_vm4, %v641_v6, %v643_v11  ;;  %v656_v18 = vsel %vm644_vm4, %v654_v7, %v655_v12 }
 0x335   :  { %v634_v19 = vcombine.low %v593_v8, %v599_v13  ;;  %v635_v20 = vcombine.low %v605_v36, %v611_v14 }
 0x337   :  { %v646_v21 = vrot.slane %v634_v19, 5  ;;  %v657_v4 = vrot.slane %v635_v20, 5 }
 0x339   :  { %v648_v22 = vsel %vm647_vm5, %v646_v21, %v645_v17  ;;  %v658_v23 = vsel %vm647_vm5, %v657_v4, %v656_v18 }
 0x33a   :  { %v650_v24 = vsel %vm649_vm6, %v646_v21, %v648_v22  ;;  %v659_v25 = vsel %vm649_vm6, %v657_v4, %v658_v23 }
 0x33b   :  { %662 = vst [vmem:[#allocation7] sm:$0xff] %v650_v24  ;;  %663 = vst [vmem:[#allocation7 + $0x8] sm:$0xff] %v659_v25 }
 0x33c   :  { %873 = shalt.err (!%p870_p6)
}
 0x33d   :  { %s874_s22 = scalar_lea.hbm %s1059_s4, 256 }
 0x33e   :  { %p875_p7 = scmp.ne.s32.totalorder %s1059_s4, %s874_s22  ;;  %p878_p8 = scmp.lt.u32.totalorder %s874_s22, %s1059_s4 }
 0x340   :  { %p880_p9 = pnand %p878_p8, %p875_p7 }
 0x342   :  { %883 = shalt.err (!%p880_p9)
}
 0x343   :  { %673 = dma.vmem_to_hbm [thread:$0]  %s671_s19, 256, %s1059_s4, [#allocation4]  }
 0x344   :  { %888 = dma.done.wait [#allocation4], 256  }
 0x345   :  { %889 = vsyncadd [#allocation4], 4294967040 }
 0x346   :  { %677 = vsyncpa [#allocation3], 1 }
 0x347   :  { %678 = vsyncpa [#allocation6], 1 }
 0x348   :  { %679 = vsyncpa [#allocation4], 1 }

</bundles_post_ra>
